<compile_context>
chip_gen: v7x
topology: tpu7x:2x2x1
jax: 0.10.0
libtpu: 0.0.40
codegen_flags: <defaults>
</compile_context>

<pallas_src>
import functools

import jax
import jax.numpy as jnp
from jax.experimental import pallas as pl
from jax.experimental.pallas import tpu as pltpu

LANES = 128
SUBLANES = 8
ROW_GROUP = SUBLANES * LANES     # kernel main part aligned to 1024 elements
MAX_TILE_ROWS = 8192             # 4 MiB f32 per input per grid step
SMOOTH = 1e-5


def _dice_partial_kernel(x_ref, t_ref, o_ref, num_ref, den_ref, *,
                         rows_valid, tile_rows, needs_mask):
    """Accumulate per-step partial sums into two (8,128) vreg accumulators.

    num_ref (VMEM, (8, LANES)): running sum of sigmoid(x) * t
    den_ref (VMEM, (8, LANES)): running sum of sigmoid(x) + t
    o_ref   (SMEM, (2,)):       [intersection, denominator] (last step only)
    """
    i = pl.program_id(0)
    last = pl.num_programs(0) - 1

    @pl.when(i == 0)
    def _init():
        num_ref[...] = jnp.zeros_like(num_ref)
        den_ref[...] = jnp.zeros_like(den_ref)

    s = jax.nn.sigmoid(x_ref[...].astype(jnp.float32))
    t = t_ref[...].astype(jnp.float32)

    def _accumulate(sv, tv):
        # (tile_rows, 128) -> (tile_rows//8, 8, 128) keeps (8,128) vreg tiles
        # intact; the axis-0 sum is pure VPU work (no XLU per step).
        prod = (sv * tv).reshape(tile_rows // SUBLANES, SUBLANES, LANES)
        tot = (sv + tv).reshape(tile_rows // SUBLANES, SUBLANES, LANES)
        num_ref[...] += jnp.sum(prod, axis=0)
        den_ref[...] += jnp.sum(tot, axis=0)

    if not needs_mask:
        # Every row of every block is valid.
        _accumulate(s, t)
    else:
        @pl.when(i != last)
        def _full_block():
            _accumulate(s, t)

        @pl.when(i == last)
        def _tail_block():
            # Row-threshold mask only (rows are always full 128 lanes because
            # the main part is 1024-element aligned).  No flat int32 index,
            # so no overflow for huge tensors.
            row = jax.lax.broadcasted_iota(jnp.int32, (tile_rows, 1), 0)
            valid = row < (rows_valid - i * tile_rows)
            _accumulate(jnp.where(valid, s, 0.0), jnp.where(valid, t, 0.0))

    @pl.when(i == last)
    def _finalize():
        # Single cross-lane/sublane (XLU) reduce for the whole kernel.
        o_ref[0] = jnp.sum(num_ref[...])
        o_ref[1] = jnp.sum(den_ref[...])


@jax.jit
def dice_loss(inputs, targets):
    """JAX/Pallas equivalent of DiceLoss.forward(inputs, targets, smooth=1e-5)."""
    x = inputs.reshape(-1)
    t = targets.reshape(-1)
    n = x.shape[0]

    n_main = (n // ROW_GROUP) * ROW_GROUP   # multiple of 8*128
    n_tail = n - n_main

    inter = jnp.float32(0.0)
    denom = jnp.float32(0.0)

    if n_main > 0:
        rows = n_main // LANES              # multiple of 8
        tile_rows = rows if rows <= MAX_TILE_ROWS else MAX_TILE_ROWS
        grid = -(-rows // tile_rows)        # cdiv
        needs_mask = (grid * tile_rows) != rows

        if n_tail:
            x2 = x[:n_main].reshape(rows, LANES)
            t2 = t[:n_main].reshape(rows, LANES)
        else:
            x2 = x.reshape(rows, LANES)     # free reshape, no copy
            t2 = t.reshape(rows, LANES)

        kernel = functools.partial(
            _dice_partial_kernel, rows_valid=rows, tile_rows=tile_rows,
            needs_mask=needs_mask)

        bytes_in = (x2.size * x2.dtype.itemsize
                    + t2.size * t2.dtype.itemsize)

        partial = pl.pallas_call(
            kernel,
            out_shape=jax.ShapeDtypeStruct((2,), jnp.float32),
            grid_spec=pltpu.PrefetchScalarGridSpec(
                num_scalar_prefetch=0,
                grid=(grid,),
                in_specs=[
                    pl.BlockSpec((tile_rows, LANES), lambda i: (i, 0)),
                    pl.BlockSpec((tile_rows, LANES), lambda i: (i, 0)),
                ],
                out_specs=pl.BlockSpec(memory_space=pltpu.SMEM),
                scratch_shapes=[
                    pltpu.VMEM((SUBLANES, LANES), jnp.float32),
                    pltpu.VMEM((SUBLANES, LANES), jnp.float32),
                ],
            ),
            compiler_params=pltpu.CompilerParams(
                dimension_semantics=("arbitrary",),
                vmem_limit_bytes=48 * 1024 * 1024,
            ),
            cost_estimate=pl.CostEstimate(
                flops=6 * n_main,
                transcendentals=n_main,
                bytes_accessed=bytes_in + 8,
            ),
        )(x2, t2)
        inter = inter + partial[0]
        denom = denom + partial[1]

    if n_tail > 0:
        # <1024-element ragged tail: plain jnp, negligible cost.
        xs = jax.nn.sigmoid(x[n_main:].astype(jnp.float32))
        ts = t[n_main:].astype(jnp.float32)
        inter = inter + jnp.sum(xs * ts)
        denom = denom + jnp.sum(xs) + jnp.sum(ts)

    dice = (2.0 * inter + SMOOTH) / (denom + SMOOTH)
    return 1.0 - dice


def _dice_loss_ref(inputs, targets, smooth=SMOOTH):
    s = jax.nn.sigmoid(inputs.reshape(-1).astype(jnp.float32))
    t = targets.reshape(-1).astype(jnp.float32)
    inter = jnp.sum(s * t)
    dice = (2.0 * inter + smooth) / (jnp.sum(s) + jnp.sum(t) + smooth)
    return 1.0 - dice


if __name__ == "__main__":
    key = jax.random.PRNGKey(0)

    def _check(shape, dtype=jnp.float32):
        global key
        k1, k2, key = jax.random.split(key, 3)
        x = jax.random.normal(k1, shape, dtype=jnp.float32).astype(dtype)
        tgt = (jax.random.uniform(k2, shape) > 0.5).astype(dtype)
        loss = dice_loss(x, tgt)
        jax.block_until_ready(loss)
        ref = _dice_loss_ref(x, tgt)
        assert jnp.allclose(loss, ref, atol=2e-5, rtol=2e-5), (shape, loss, ref)

    # 1) Small NCHW case (single full block, aligned to 1024).
    _check((2, 4, 16, 16))

    # 2) Ragged case (n not a multiple of 1024) -> wrapper tail path.
    _check((2, 3, 15, 17))

    # 3) Single-block medium case (rows <= MAX_TILE_ROWS).
    _check((2, 4, 128, 320))

    # 4) Multi-block case (rows > MAX_TILE_ROWS) -> cross-step accumulation
    #    plus a partially valid (row-masked) final block.
    _check((2, 4, 384, 352))

    # 5) Tiny case with n < 1024 -> pure-jnp path (no kernel launch).
    _check((3, 5, 5))

    # 6) Native bf16 inputs stay narrow end-to-end (halved HBM traffic).
    _check((2, 4, 16, 16), dtype=jnp.bfloat16)

    print("KERNEL_OK")
</pallas_src>

<mosaic_0001>
module attributes {stable_mosaic.version = 11 : i64} {
  func.func @_dice_partial_kernel(%arg0: i32, %arg1: memref<16x128xf32, #tpu.memory_space<vmem>>, %arg2: memref<16x128xf32, #tpu.memory_space<vmem>>, %arg3: memref<2xf32, #tpu.memory_space<smem>>, %arg4: memref<8x128xf32, #tpu.memory_space<vmem>>, %arg5: memref<8x128xf32, #tpu.memory_space<vmem>>) attributes {dimension_semantics = [#tpu.dimension_semantics<arbitrary>], iteration_bounds = array<i64: 1>, scalar_prefetch = 0 : i64, scratch_operands = 2 : i64, tpu.core_type = #tpu.core_type<tc>, window_params = [{transform_indices = @transform_0, window_bounds = array<i64: 16, 128>}, {transform_indices = @transform_1, window_bounds = array<i64: 16, 128>}, {transform_indices = @transform_2, window_bounds = array<i64: 2>}]} {
    %c0_i32 = arith.constant 0 : i32
    %0 = arith.cmpi eq, %arg0, %c0_i32 : i32
    %1 = arith.extui %0 : i1 to i32
    %c0_i32_0 = arith.constant 0 : i32
    %2 = arith.cmpi ne, %1, %c0_i32_0 : i32
    scf.if %2 {
      %cst_16 = arith.constant 0.000000e+00 : f32
      %25 = vector.broadcast %cst_16 : f32 to vector<8x128xf32>
      %c0_17 = arith.constant 0 : index
      %c0_18 = arith.constant 0 : index
      %26 = vector.load %arg4[%c0_17, %c0_18] : memref<8x128xf32, #tpu.memory_space<vmem>>, vector<8x128xf32>
      tpu.vector_store %arg4[%c0_17, %c0_18], %25 {strides = array<i32>} : memref<8x128xf32, #tpu.memory_space<vmem>>, vector<8x128xf32>,
      %cst_19 = arith.constant 0.000000e+00 : f32
      %27 = vector.broadcast %cst_19 : f32 to vector<8x128xf32>
      %c0_20 = arith.constant 0 : index
      %c0_21 = arith.constant 0 : index
      %28 = vector.load %arg5[%c0_20, %c0_21] : memref<8x128xf32, #tpu.memory_space<vmem>>, vector<8x128xf32>
      tpu.vector_store %arg5[%c0_20, %c0_21], %27 {strides = array<i32>} : memref<8x128xf32, #tpu.memory_space<vmem>>, vector<8x128xf32>,
    } else {
    }
    %c0 = arith.constant 0 : index
    %c0_1 = arith.constant 0 : index
    %3 = vector.load %arg1[%c0, %c0_1] : memref<16x128xf32, #tpu.memory_space<vmem>>, vector<16x128xf32>
    %4 = arith.negf %3 : vector<16x128xf32>
    %5 = math.exp %4 : vector<16x128xf32>
    %cst = arith.constant 1.000000e+00 : f32
    %6 = vector.broadcast %cst : f32 to vector<16x128xf32>
    %7 = arith.addf %6, %5 : vector<16x128xf32>
    %8 = arith.divf %6, %7 : vector<16x128xf32>
    %c0_2 = arith.constant 0 : index
    %c0_3 = arith.constant 0 : index
    %9 = vector.load %arg2[%c0_2, %c0_3] : memref<16x128xf32, #tpu.memory_space<vmem>>, vector<16x128xf32>
    %10 = arith.mulf %8, %9 : vector<16x128xf32>
    %11 = vector.shape_cast %10 : vector<16x128xf32> to vector<2x8x128xf32>
    %12 = arith.addf %8, %9 : vector<16x128xf32>
    %13 = vector.shape_cast %12 : vector<16x128xf32> to vector<2x8x128xf32>
    %c0_4 = arith.constant 0 : index
    %c0_5 = arith.constant 0 : index
    %14 = vector.load %arg4[%c0_4, %c0_5] : memref<8x128xf32, #tpu.memory_space<vmem>>, vector<8x128xf32>
    %cst_6 = arith.constant dense<0.000000e+00> : vector<8x128xf32>
    %15 = vector.multi_reduction <add>, %11, %cst_6 [0] : vector<2x8x128xf32> to vector<8x128xf32>
    %16 = arith.addf %14, %15 : vector<8x128xf32>
    %c0_7 = arith.constant 0 : index
    %c0_8 = arith.constant 0 : index
    %17 = vector.load %arg4[%c0_7, %c0_8] : memref<8x128xf32, #tpu.memory_space<vmem>>, vector<8x128xf32>
    tpu.vector_store %arg4[%c0_7, %c0_8], %16 {strides = array<i32>} : memref<8x128xf32, #tpu.memory_space<vmem>>, vector<8x128xf32>,
    %c0_9 = arith.constant 0 : index
    %c0_10 = arith.constant 0 : index
    %18 = vector.load %arg5[%c0_9, %c0_10] : memref<8x128xf32, #tpu.memory_space<vmem>>, vector<8x128xf32>
    %cst_11 = arith.constant dense<0.000000e+00> : vector<8x128xf32>
    %19 = vector.multi_reduction <add>, %13, %cst_11 [0] : vector<2x8x128xf32> to vector<8x128xf32>
    %20 = arith.addf %18, %19 : vector<8x128xf32>
    %c0_12 = arith.constant 0 : index
    %c0_13 = arith.constant 0 : index
    %21 = vector.load %arg5[%c0_12, %c0_13] : memref<8x128xf32, #tpu.memory_space<vmem>>, vector<8x128xf32>
    tpu.vector_store %arg5[%c0_12, %c0_13], %20 {strides = array<i32>} : memref<8x128xf32, #tpu.memory_space<vmem>>, vector<8x128xf32>,
    %c0_i32_14 = arith.constant 0 : i32
    %22 = arith.cmpi eq, %arg0, %c0_i32_14 : i32
    %23 = arith.extui %22 : i1 to i32
    %c0_i32_15 = arith.constant 0 : i32
    %24 = arith.cmpi ne, %23, %c0_i32_15 : i32
    scf.if %24 {
      %c0_16 = arith.constant 0 : index
      %c0_17 = arith.constant 0 : index
      %25 = vector.load %arg4[%c0_16, %c0_17] : memref<8x128xf32, #tpu.memory_space<vmem>>, vector<8x128xf32>
      %26 = vector.shape_cast %25 : vector<8x128xf32> to vector<1x8x128xf32>
      %cst_18 = arith.constant dense<0.000000e+00> : vector<1xf32>
      %27 = vector.multi_reduction <add>, %26, %cst_18 [1, 2] : vector<1x8x128xf32> to vector<1xf32>
      %28 = vector.shape_cast %27 : vector<1xf32> to vector<1x1x1xf32>
      %29 = vector.extract %28[0, 0, 0] : f32 from vector<1x1x1xf32>
      %c0_19 = arith.constant 0 : index
      %30 = memref.load %arg3[%c0_19] : memref<2xf32, #tpu.memory_space<smem>>
      memref.store %29, %arg3[%c0_19] : memref<2xf32, #tpu.memory_space<smem>>
      %c0_20 = arith.constant 0 : index
      %c0_21 = arith.constant 0 : index
      %31 = vector.load %arg5[%c0_20, %c0_21] : memref<8x128xf32, #tpu.memory_space<vmem>>, vector<8x128xf32>
      %32 = vector.shape_cast %31 : vector<8x128xf32> to vector<1x8x128xf32>
      %cst_22 = arith.constant dense<0.000000e+00> : vector<1xf32>
      %33 = vector.multi_reduction <add>, %32, %cst_22 [1, 2] : vector<1x8x128xf32> to vector<1xf32>
      %34 = vector.shape_cast %33 : vector<1xf32> to vector<1x1x1xf32>
      %35 = vector.extract %34[0, 0, 0] : f32 from vector<1x1x1xf32>
      %c1 = arith.constant 1 : index
      %36 = memref.load %arg3[%c1] : memref<2xf32, #tpu.memory_space<smem>>
      memref.store %35, %arg3[%c1] : memref<2xf32, #tpu.memory_space<smem>>
    } else {
    }
    return
  }
  func.func @transform_0(%arg0: i32) -> (i32, i32) {
    %c0_i32 = arith.constant 0 : i32
    %c0_i32_0 = arith.constant 0 : i32
    return %arg0, %c0_i32 : i32, i32
  }
  func.func @transform_1(%arg0: i32) -> (i32, i32) {
    %c0_i32 = arith.constant 0 : i32
    %c0_i32_0 = arith.constant 0 : i32
    return %arg0, %c0_i32 : i32, i32
  }
  func.func @transform_2(%arg0: i32) -> i32 {
    %c0_i32 = arith.constant 0 : i32
    %c0_i32_0 = arith.constant 0 : i32
    return %c0_i32 : i32
  }
}

</mosaic_0001>

<bundles_post_ra>
// kernel: dice_loss.1
= control target key start
LH: loop header
LB: loop body
LE: loop exit
PB: predicated region body
PF: predicated region fallthrough
CT: control target
= control target key end

     0   :  { %s148_s0 = inlined_call_operand.vmem [shape: f32[16,128], index: 0, kind: input, shape index: {}]   ;;  %s149_s1 = inlined_call_operand.vmem [shape: f32[16,128], index: 1, kind: input, shape index: {}]   ;;  %s150_s2 = inlined_call_operand.vmem [shape: f32[2], index: 2, kind: output, shape index: {}]  }
   0x1   :  { %v18_v0 = vld [vmem:[%s148_s0] sm:$0xff]  ;;  %v19_v1 = vld [vmem:[%s148_s0 + $0x8] sm:$0xff] }
   0x2   :  { %v88_v2 = vmul.f32 -1.442695, %v18_v0  ;;  %v89_v3 = vmul.f32 -1.442695, %v19_v1 }
   0x3   :  { %7 = vsyncpa [#allocation5], 0  ;;  %v32_v8 = vld [vmem:[%s149_s1] sm:$0xff]  ;;  %v33_v9 = vld [vmem:[%s149_s1 + $0x8] sm:$0xff]  ;;  %s79_s18 = sshll.u32 %s150_s2, 4  ;;  %s80_s18 = int_to_ptr.vmem [resolvable:$true] %s79_s18 }
   0x4   :  { %95 = vpow2.f32 %v88_v2  ;;  %s103_s20 = scalar_lea.vmem %s80_s18, 16  ;;  %p108_p1 = scmp.lt.s32.totalorder %s80_s18, %s80_s18 }
   0x5   :  { %97 = vpow2.f32 %v89_v3  ;;  %p104_p0 = scmp.ne.s32.totalorder %s80_s18, %s103_s20  ;;  %p109_p2 = scmp.lt.s32.totalorder %s103_s20, %s103_s20 }
   0x7   :  { %p110_p3 = por %p109_p2, %p108_p1 }
   0x9   :  { %p111_p4 = pnand %p110_p3, %p104_p0 }
   0xe   :  { %v96_v4 = vpop.eup %95 }
   0xf   :  { %v98_v5 = vpop.eup %97  ;;  %v26_v6 = vadd.f32 1.0, %v96_v4 }
  0x10   :  { %v27_v7 = vadd.f32 1.0, %v98_v5 }
  0x11   :  { %99 = vrcp.f32 %v26_v6 }
  0x12   :  { %101 = vrcp.f32 %v27_v7 }
  0x1b   :  { %v100_v10 = vpop.eup %99 }
  0x1c   :  { %v102_v11 = vpop.eup %101  ;;  %v34_v12 = vmul.f32 %v100_v10, %v32_v8  ;;  %v36_v14 = vadd.f32 %v100_v10, %v32_v8 }
  0x1d   :  { %v35_v13 = vmul.f32 %v102_v11, %v33_v9  ;;  %v37_v15 = vadd.f32 %v102_v11, %v33_v9 }
  0x1f   :  { %v39_v16 = vadd.f32 %v35_v13, %v34_v12  ;;  %v43_v17 = vadd.f32 %v37_v15, %v36_v14 }
  0x21   :  { %50 = vadd.xlane.f32.xlu0 %v39_v16 }
  0x25   :  { %62 = vadd.xlane.f32.xlu0 %v43_v17 }
  0xae   :  { %v51_v18 = vpop.xlane.xlu0 %50 }
  0xaf   :  { %v52_v19 = vrot.slane %v51_v18, 4 }
  0xb1   :  { %v53_v20 = vadd.f32 %v52_v19, %v51_v18 }
  0xb2   :  { %v63_v21 = vpop.xlane.xlu0 %62 }
  0xb3   :  { %v54_v22 = vrot.slane %v53_v20, 2  ;;  %v64_v23 = vrot.slane %v63_v21, 4 }
  0xb5   :  { %v65_v24 = vadd.f32 %v64_v23, %v63_v21  ;;  %v55_v25 = vadd.f32 %v54_v22, %v53_v20 }
  0xb7   :  { %v66_v26 = vrot.slane %v65_v24, 2  ;;  %v56_v27 = vrot.slane %v55_v25, 1 }
  0xb9   :  { %v67_v28 = vadd.f32 %v66_v26, %v65_v24  ;;  %v57_v29 = vadd.f32 %v56_v27, %v55_v25 }
  0xbb   :  { %90 = vpush %v57_v29  ;;  %v68_v30 = vrot.slane %v67_v28, 1 }
  0xbd   :  { %v69_v31 = vadd.f32 %v68_v30, %v67_v28 }
  0xbf   :  { %92 = vpush %v69_v31 }
  0xec   :  { %s91_s0 = spop %90 }
  0xed   :  { %60 = sst [smem:[#allocation4]] %s91_s0 }
  0xf0   :  { %s93_s19 = spop %92 }
  0xf1   :  { %72 = sst [smem:[#allocation4 + $0x1]] %s93_s19 }
  0xf2   :  { %114 = shalt.err (!%p111_p4)
}
  0xf3   :  { %s117_s21 = smov [#allocation4]  }
  0xf4   :  { %82 = dma.smem_to_vmem %s117_s21, 16, %s80_s18, [#allocation5]  }
  0xf5   :  { %115 = dma.done.wait [#allocation5], 16  }
  0xf6   :  { %116 = vsyncadd [#allocation5], 4294967280 }
  0xf7   :  { %86 = sfence }
  0xf8   :  { %87 = vsyncpa [#allocation5], 1 }

</bundles_post_ra>
